<compile_context>
chip_gen: v7x
topology: tpu7x:2x2x1
jax: 0.10.0
libtpu: 0.0.40
codegen_flags: <defaults>
</compile_context>

<pallas_src>
import jax
import jax.numpy as jnp
from jax import lax
from jax.experimental import pallas as pl
from jax.experimental.pallas import tpu as pltpu


def _round_up(x, m):
    return (x + m - 1) // m * m


def _baseline_mlp_kernel(h_ref, w1_ref, b1_ref, w2t_ref, b2_ref, o_ref):
    # ---- layer 1: Linear + tanh  (MXU matmul, f32 accumulate; VPU bias, EUP tanh)
    h = h_ref[...].astype(jnp.float32)          # (tm, D)
    w1 = w1_ref[...].astype(jnp.float32)        # (D, H)  (resident across the grid)
    a1 = jnp.tanh(
        jnp.dot(h, w1, preferred_element_type=jnp.float32)
        + b1_ref[...].astype(jnp.float32)       # (1, H) sublane-broadcast
    )                                           # (tm, H) f32

    # ---- layer 2 (output_size == 1): contract H so the result is a lane-dense
    # (1, tm) row -> unmasked full-lane stores instead of lane-width-1 vst.msk,
    # and no 1-column MXU pass.
    w2t = w2t_ref[...].astype(jnp.float32)      # (1, H) == W2^T (resident)
    z2 = lax.dot_general(
        w2t, a1, (((1,), (1,)), ((), ())),      # contract over H -> (1, tm)
        preferred_element_type=jnp.float32)
    o_ref[...] = jnp.tanh(z2 + b2_ref[0]).astype(o_ref.dtype)


def baseline_mlp_pallas(h2d, params, block_rows=256):
    """Fused baseline head for a flat batch of rows.

    h2d:    (R, D) hidden-state rows (R = batch, or T*B for a whole trajectory).
    params: (W1 (D,H), b1 (1,H) or (H,), W2 (H,1), b2 (1,1)/(1,)/()).
    Returns (R, 1) baselines, b = tanh(tanh(h @ W1 + b1) @ W2 + b2).
    """
    w1, b1, w2, b2 = params
    R, D = h2d.shape
    H = w1.shape[1]
    O = w2.shape[-1] if w2.ndim > 1 else 1
    assert O == 1, "baseline head is a scalar regressor (output_size == 1)"

    # Pick a row-block size. Multi-block path uses a 128-multiple so the (1, tm)
    # output block is lane-dense; the tiny single-block path just takes the whole
    # (padded) array as one block.
    if R <= block_rows:
        tm = _round_up(R, 8)
    else:
        tm = block_rows                      # multiple of 128 by construction
    r_pad = _round_up(R, tm)
    nb = r_pad // tm
    if r_pad != R:
        h2d = jnp.pad(h2d, ((0, r_pad - R), (0, 0)))

    b1_2d = b1.reshape(1, H)
    w2t = w2.reshape(1, H)                   # W2 is (H, 1); row-major reshape == W2^T
    b2_s = b2.reshape((1,))                  # single scalar -> SMEM

    itemsize = jnp.dtype(h2d.dtype).itemsize
    cost = pl.CostEstimate(
        flops=2 * r_pad * (D * H + H * O),
        transcendentals=r_pad * (H + O),     # tanh counts
        bytes_accessed=int(
            r_pad * D * itemsize
            + w1.size * jnp.dtype(w1.dtype).itemsize
            + b1.size * jnp.dtype(b1.dtype).itemsize
            + w2.size * jnp.dtype(w2.dtype).itemsize
            + b2.size * jnp.dtype(b2.dtype).itemsize
            + r_pad * itemsize),
    )

    out = pl.pallas_call(
        _baseline_mlp_kernel,
        out_shape=jax.ShapeDtypeStruct((1, r_pad), h2d.dtype),
        grid=(nb,),
        in_specs=[
            pl.BlockSpec((tm, D), lambda i: (i, 0)),        # hidden-state rows
            pl.BlockSpec((D, H), lambda i: (0, 0)),         # W1   (resident, DMA once)
            pl.BlockSpec((1, H), lambda i: (0, 0)),         # b1   (resident)
            pl.BlockSpec((1, H), lambda i: (0, 0)),         # W2^T (resident)
            pl.BlockSpec(memory_space=pltpu.MemorySpace.SMEM),  # b2 scalar
        ],
        out_specs=pl.BlockSpec((1, tm), lambda i: (0, i)),  # lane-dense output slab
        compiler_params=pltpu.CompilerParams(
            dimension_semantics=("parallel",)),             # v7x: shard blocks over 2 TCs
        cost_estimate=cost,
    )(h2d, w1, b1_2d, w2t, b2_s)

    return out.reshape(r_pad, 1)[:R]


def baseline_network_forward(h_t, params, block_rows=256):
    """Same signature/semantics as the PyTorch forward: h_t = (h_i, c_i) -> (B, 1)."""
    h_i, _c_i = h_t                          # c_i unused, exactly like PyTorch
    return baseline_mlp_pallas(h_i, params, block_rows)


def baseline_network_forward_sequence(h_seq, params, block_rows=256):
    """Batched-over-time path (recommended): h_seq (T, B, D) -> baselines (T, B, 1).

    Amortizes the pallas_call / DMA overhead across a whole trajectory; weights
    stay resident in VMEM for the full grid.
    """
    T, B, D = h_seq.shape
    b = baseline_mlp_pallas(h_seq.reshape(T * B, D), params, block_rows)
    return b.reshape(T, B, 1)


def init_params(key, input_size, hidden_size, output_size, dtype=jnp.float32):
    """Deterministic PyTorch-Linear-style init: U(-1/sqrt(fan_in), 1/sqrt(fan_in))."""
    k1, k2, k3, k4 = jax.random.split(key, 4)
    lim1 = 1.0 / jnp.sqrt(jnp.asarray(input_size, dtype))
    lim2 = 1.0 / jnp.sqrt(jnp.asarray(hidden_size, dtype))
    w1 = jax.random.uniform(k1, (input_size, hidden_size), dtype, -lim1, lim1)
    b1 = jax.random.uniform(k2, (1, hidden_size), dtype, -lim1, lim1)
    w2 = jax.random.uniform(k3, (hidden_size, output_size), dtype, -lim2, lim2)
    b2 = jax.random.uniform(k4, (1, output_size), dtype, -lim2, lim2)
    return w1, b1, w2, b2


def _reference(h2d, params):
    w1, b1, w2, b2 = params
    return jnp.tanh(jnp.tanh(h2d @ w1 + b1.reshape(1, -1)) @ w2 + b2.reshape(1, -1))


if __name__ == "__main__":
    T = 64            # timesteps per trajectory (batched into one pallas_call)
    B = 16            # batch
    input_size = 32   # core-network hidden state size
    hidden_size = 32  # hidden width of the 2-layer dense encoder
    output_size = 1   # baseline is a scalar per example -> b_t shape (B, 1)

    key = jax.random.PRNGKey(0)
    k_h, k_c, k_p = jax.random.split(key, 3)
    h_seq = jax.random.normal(k_h, (T, B, input_size), jnp.float32)
    c_seq = jax.random.normal(k_c, (T, B, input_size), jnp.float32)  # unused, as in PyTorch
    params = init_params(k_p, input_size, hidden_size, output_size)

    # Recommended path: whole trajectory in a single kernel launch.
    b_seq = baseline_network_forward_sequence(h_seq, params)
    b_seq = jax.block_until_ready(b_seq)

    # Single-timestep path with the original forward((h_i, c_i)) semantics.
    b_t = baseline_network_forward((h_seq[0], c_seq[0]), params)
    b_t = jax.block_until_ready(b_t)

    # Sanity check against pure-JAX reference.
    ref = _reference(h_seq.reshape(T * B, input_size), params).reshape(T, B, 1)
    assert b_seq.shape == (T, B, 1)
    assert b_t.shape == (B, output_size)
    assert jnp.allclose(b_seq, ref, atol=1e-5, rtol=1e-5)
    assert jnp.allclose(b_t, ref[0], atol=1e-5, rtol=1e-5)

    print("KERNEL_OK")
</pallas_src>

<mosaic_0001>
module attributes {stable_mosaic.version = 11 : i64} {
  func.func @_baseline_mlp_kernel(%arg0: i32, %arg1: memref<256x32xf32, #tpu.memory_space<vmem>>, %arg2: memref<32x32xf32, #tpu.memory_space<vmem>>, %arg3: memref<1x32xf32, #tpu.memory_space<vmem>>, %arg4: memref<1x32xf32, #tpu.memory_space<vmem>>, %arg5: memref<1xf32, #tpu.memory_space<smem>>, %arg6: memref<1x256xf32, #tpu.memory_space<vmem>>) attributes {dimension_semantics = [#tpu.dimension_semantics<parallel>], iteration_bounds = array<i64: 4>, scalar_prefetch = 0 : i64, scratch_operands = 0 : i64, tpu.core_type = #tpu.core_type<tc>, window_params = [{transform_indices = @transform_0, window_bounds = array<i64: 256, 32>}, {pipeline_mode = #tpu.pipeline_mode<synchronous>, transform_indices = @transform_1, window_bounds = array<i64: 32, 32>}, {pipeline_mode = #tpu.pipeline_mode<synchronous>, transform_indices = @transform_2, window_bounds = array<i64: 1, 32>}, {pipeline_mode = #tpu.pipeline_mode<synchronous>, transform_indices = @transform_3, window_bounds = array<i64: 1, 32>}, {transform_indices = @transform_4, window_bounds = array<i64: 1>}, {transform_indices = @transform_5, window_bounds = array<i64: 1, 256>}]} {
    %c0 = arith.constant 0 : index
    %c0_0 = arith.constant 0 : index
    %0 = vector.load %arg1[%c0, %c0_0] : memref<256x32xf32, #tpu.memory_space<vmem>>, vector<256x32xf32>
    %c0_1 = arith.constant 0 : index
    %c0_2 = arith.constant 0 : index
    %1 = vector.load %arg2[%c0_1, %c0_2] : memref<32x32xf32, #tpu.memory_space<vmem>>, vector<32x32xf32>
    %cst = arith.constant dense<0.000000e+00> : vector<256x32xf32>
    %2 = tpu.matmul %0, %1, %cst {dimension_numbers = #tpu.dot_dimension_numbers<[1], [0], [0], [1], [0, 0, 1, 1], [], []>} : vector<256x32xf32>, vector<32x32xf32>, vector<256x32xf32> -> vector<256x32xf32>
    %c0_3 = arith.constant 0 : index
    %c0_4 = arith.constant 0 : index
    %3 = vector.load %arg3[%c0_3, %c0_4] : memref<1x32xf32, #tpu.memory_space<vmem>>, vector<1x32xf32>
    %4 = vector.broadcast %3 : vector<1x32xf32> to vector<256x32xf32>
    %5 = arith.addf %2, %4 : vector<256x32xf32>
    %6 = math.tanh %5 : vector<256x32xf32>
    %c0_5 = arith.constant 0 : index
    %c0_6 = arith.constant 0 : index
    %7 = vector.load %arg4[%c0_5, %c0_6] : memref<1x32xf32, #tpu.memory_space<vmem>>, vector<1x32xf32>
    %cst_7 = arith.constant dense<0.000000e+00> : vector<1x256xf32>
    %8 = tpu.matmul %7, %6, %cst_7 {dimension_numbers = #tpu.dot_dimension_numbers<[1], [1], [0], [0], [0, 0, 1, 0], [], []>} : vector<1x32xf32>, vector<256x32xf32>, vector<1x256xf32> -> vector<1x256xf32>
    %c0_8 = arith.constant 0 : index
    %9 = memref.load %arg5[%c0_8] : memref<1xf32, #tpu.memory_space<smem>>
    %10 = vector.broadcast %9 : f32 to vector<1x256xf32>
    %11 = arith.addf %8, %10 : vector<1x256xf32>
    %12 = math.tanh %11 : vector<1x256xf32>
    %c0_9 = arith.constant 0 : index
    %c0_10 = arith.constant 0 : index
    %13 = vector.load %arg6[%c0_9, %c0_10] : memref<1x256xf32, #tpu.memory_space<vmem>>, vector<1x256xf32>
    tpu.vector_store %arg6[%c0_9, %c0_10], %12 {strides = array<i32>} : memref<1x256xf32, #tpu.memory_space<vmem>>, vector<1x256xf32>,
    return
  }
  func.func @transform_0(%arg0: i32) -> (i32, i32) {
    %c0_i32 = arith.constant 0 : i32
    %c0_i32_0 = arith.constant 0 : i32
    return %arg0, %c0_i32 : i32, i32
  }
  func.func @transform_1(%arg0: i32) -> (i32, i32) {
    %c0_i32 = arith.constant 0 : i32
    %c0_i32_0 = arith.constant 0 : i32
    %c0_i32_1 = arith.constant 0 : i32
    return %c0_i32, %c0_i32_0 : i32, i32
  }
  func.func @transform_2(%arg0: i32) -> (i32, i32) {
    %c0_i32 = arith.constant 0 : i32
    %c0_i32_0 = arith.constant 0 : i32
    %c0_i32_1 = arith.constant 0 : i32
    return %c0_i32, %c0_i32_0 : i32, i32
  }
  func.func @transform_3(%arg0: i32) -> (i32, i32) {
    %c0_i32 = arith.constant 0 : i32
    %c0_i32_0 = arith.constant 0 : i32
    %c0_i32_1 = arith.constant 0 : i32
    return %c0_i32, %c0_i32_0 : i32, i32
  }
  func.func @transform_4(%arg0: i32) -> i32 {
    %c0_i32 = arith.constant 0 : i32
    %c0_i32_0 = arith.constant 0 : i32
    return %c0_i32 : i32
  }
  func.func @transform_5(%arg0: i32) -> (i32, i32) {
    %c0_i32 = arith.constant 0 : i32
    %c0_i32_0 = arith.constant 0 : i32
    return %c0_i32, %arg0 : i32, i32
  }
}

</mosaic_0001>

<bundles_post_ra>
// kernel: tpu_custom_call.1
= control target key start
LH: loop header
LB: loop body
LE: loop exit
PB: predicated region body
PF: predicated region fallthrough
CT: control target
= control target key end

     0   :  { %s1697_s0 = inlined_call_operand.vmem [shape: f32[1024,32], index: 0, kind: input, shape index: {}]   ;;  %s1698_s1 = inlined_call_operand.vmem [shape: f32[32,32], index: 1, kind: input, shape index: {}]   ;;  %s1699_s2 = inlined_call_operand.vmem [shape: f32[1,32], index: 2, kind: input, shape index: {}]   ;;  %s1700_s3 = inlined_call_operand.vmem [shape: f32[1,32], index: 3, kind: input, shape index: {}]   ;;  %s1701_s4 = inlined_call_operand.<no memory space> [shape: f32[1], index: 4, kind: input, shape index: {}]   ;;  %s1702_s5 = inlined_call_operand.hbm [shape: f32[1,1024], index: 5, kind: output, shape index: {}]  }
   0x1   :  { %10 = sst [smem:[#allocation2]] %s1701_s4 }
   0x2   :  { %11 = vsyncpa [#allocation4], 0 }
   0x3   :  { %13 = vsyncpa [#allocation4 + $0x1], 0  ;;  %s1364_s20 = smov 0   ;;  %s1366_s21 = smov 0  }
   0x4   :  { %s1368_s22 = smov 0   ;;  %s1370_s23 = smov 0  }
   0x5 LB: > { %s895_s4 = sadd.s32 4294967295, %s1327_s23   ;;  %s896_s24 = sadd.s32 4294967294, %s1327_s23   ;;  %s1327_s23 = sphi %s1370_s23, %s1710_s23   ;;  %s1323_s22 = sphi %s1368_s22, %s1709_s22   ;;  %s1319_s21 = sphi %s1366_s21, %s1708_s21   ;;  %s1315_s20 = sphi %s1364_s20, %s1707_s20  }
   0x6   : > { %s1387_s25 = sadd.s32 1, %s1327_s23   ;;  %s136_s26 = sadd.s32 1, %s1323_s22 }
   0x7   : > { %s133_s27 = ssub.s32 %s1327_s23, %s1387_s25  ;;  %p146_p0 = scmp.ne.s32.totalorder %s1323_s22, %s1319_s21 }
   0x8   : > { %p134_p1 = scmp.eq.s32.totalorder %s133_s27, 0  ;;  %p147_p2 = scmp.eq.s32.totalorder %s895_s4, 3 }
   0x9   : > { %p152_p3 = scmp.ne.s32.totalorder %s1319_s21, %s1315_s20  ;;  %p153_p4 = scmp.eq.s32.totalorder %s896_s24, 3 }
   0xa   : > { %s1397_s28 = scalar_select %p134_p1, %s1323_s22, %s136_s26  }
   0xb   : > { %p1399_p5 = por %p147_p2, %p146_p0  ;;  %p1403_p6 = por %p153_p4, %p152_p3 }
   0xc   : > { %p899_p7 = scmp.ge.s32.totalorder %s1327_s23, 1  ;;  %p192_p8 = scmp.lt.s32.totalorder %s1327_s23, 5 }
   0xe   : > { %p193_p9 = pnand %p899_p7, %p192_p8 }
   0xf   : > { %v259_v0 = vld [vmem:[%s1698_s1] sm:$0xff] (!%p193_p9)  ;;  %v260_v1 = vld [vmem:[%s1698_s1 + $0x8] sm:$0xff] (!%p193_p9)  ;;  %v261_v2 = vld [vmem:[%s1698_s1 + $0x10] sm:$0xff] (!%p193_p9)  ;;  %s1418_s12 = sshll.u32 (!%p193_p9), %s895_s4, 5  ;;  %vm270_vm0 = vcmask (!%p193_p9), 261120   ;;  %s625_s6 = sld [smem:[#allocation2]] (!%p193_p9) }
  0x10   : > { %196 = sbr.rel (%p193_p9) target bundleno = 599 (0x257), region = 40  ;;  %v1101_v3 = vpack.c.bf16 (!%p193_p9), %v260_v1, %v259_v0  ;;  %v262_v4 = vld [vmem:[%s1698_s1 + $0x18] sm:$0xff] (!%p193_p9)  ;;  %p221_p10 = scmp.lt.s32.totalorder (!%p193_p9), %s1418_s12, 127  ;;  %v1497_v38 = vld [vmem:[%s1700_s3] sm:$0x1] (!%p193_p9)  ;;  %vm1579_vm1 = vmpackc.low (!%p193_p9), %vm270_vm0, %vm270_vm0 }
  0x11   : > { %v1105_v5 = vpack.c.bf16 (!%p193_p9), %v262_v4, %v261_v2  ;;  %1043 = vmatprep.mubr.msk.f32.mxu1 (!%p193_p9), %vm270_vm0, %v1497_v38  ;;  %v1504_v39 = vld [vmem:[%s1699_s2] ss:$0 sm:$0xff] (!%p193_p9)  ;;  %s217_s7 = sand.u32 (!%p193_p9), 1, %s1319_s21   ;;  %s1655_s14 = scalar_lea.hbm (!%p193_p9), %s1702_s5, %s1418_s12 }
  0x12   : > { %1102 = vmatprep.subr.bf16.mxu0 (!%p193_p9), %v1101_v3  ;;  %s900_s8 = sshll.u32 (!%p193_p9), %s217_s7, 1  ;;  %s1330_s17 = smov (!%p193_p9), [#allocation3]  }
  0x13   : > { %1104 = vmatpush3.bf16.msra.mxu0 (!%p193_p9), %v1101_v3  ;;  %s219_s9 = scalar_lea.vmem (!%p193_p9), [#allocation3], %s900_s8  ;;  %s1269_s18 = sshll.u32 (!%p193_p9), %s1330_s17, 4  ;;  %s1270_s18 = int_to_ptr.vmem [resolvable:$false] %s1269_s18 }
  0x14   : > { %1106 = vmatprep.subr.bf16.mxu0 (!%p193_p9), %v1105_v5  ;;  %s837_s10 = sshll.u32 (!%p193_p9), %s219_s9, 4  ;;  %s1657_s10 = int_to_ptr.vmem [resolvable:$true] %s837_s10 }
  0x15   : > { %p1272_p0 = scmp.lt.s32.totalorder (!%p193_p9), %s1657_s10, %s1270_s18 }
  0x17   : > { %s222_s15 = scalar_select %p221_p10, %s1418_s12, 127  ;;  %1108 = vmatpush3.bf16.msra.mxu0 %v1105_v5 }
  0x19   : > { %s902_s16 = sshll.u32 %s222_s15, 3  ;;  %s823_s15 = scalar_lea.sflag [#allocation4], %s217_s7 }
  0x1a   : > { %s1428_s19 = scalar_lea.vmem %s1697_s0, %s902_s16  ;;  %s1265_s16 = scalar_lea.vmem %s1657_s10, 32 }
  0x1b   : > { %v227_v6 = vld [vmem:[%s1428_s19] sm:$0xff]  ;;  %v228_v7 = vld [vmem:[%s1428_s19 + $0x8] sm:$0xff]  ;;  %v229_v8 = vld [vmem:[%s1428_s19 + $0x10] sm:$0xff]  ;;  %p1266_p11 = scmp.ne.s32.totalorder %s1657_s10, %s1265_s16 }
  0x1c   : > { %1053 = vmatprep.mubr.msk.f32.mxu0 %vm270_vm0, %v227_v6  ;;  %v230_v9 = vld [vmem:[%s1428_s19 + $0x18] sm:$0xff]  ;;  %v231_v10 = vld [vmem:[%s1428_s19 + $0x20] sm:$0xff]  ;;  %v232_v11 = vld [vmem:[%s1428_s19 + $0x28] sm:$0xff] }
  0x1d   : > { %1054 = vmatmul.mubr.msk.f32.vlgmr.msra.gmra.mrb[0].mxu0 %vm270_vm0, %v228_v7  ;;  %v233_v12 = vld [vmem:[%s1428_s19 + $0x30] sm:$0xff]  ;;  %v234_v13 = vld [vmem:[%s1428_s19 + $0x38] sm:$0xff]  ;;  %v235_v14 = vld [vmem:[%s1428_s19 + $0x40] sm:$0xff]  ;;  %p1267_p12 = pnand %p1266_p11, %p1399_p5 }
  0x1e   : > { %1056 = vmatprep.mubr.msk.f32.mxu0 %vm270_vm0, %v229_v8  ;;  %v236_v15 = vld [vmem:[%s1428_s19 + $0x48] sm:$0xff]  ;;  %v237_v16 = vld [vmem:[%s1428_s19 + $0x50] sm:$0xff]  ;;  %v238_v17 = vld [vmem:[%s1428_s19 + $0x58] sm:$0xff] }
  0x1f   : > { %v239_v18 = vld [vmem:[%s1428_s19 + $0x60] sm:$0xff]  ;;  %v240_v19 = vld [vmem:[%s1428_s19 + $0x68] sm:$0xff]  ;;  %v241_v20 = vld [vmem:[%s1428_s19 + $0x70] sm:$0xff]  ;;  %p1268_p13 = pneg %p1267_p12 }
  0x20   : > { %v242_v21 = vld [vmem:[%s1428_s19 + $0x78] sm:$0xff]  ;;  %v243_v22 = vld [vmem:[%s1428_s19 + $0x80] sm:$0xff]  ;;  %v244_v23 = vld [vmem:[%s1428_s19 + $0x88] sm:$0xff] }
  0x21   : > { %1057 = vmatmul.mubr.msk.f32.gmra.mrb[2].mxu0 %vm270_vm0, %v230_v9  ;;  %v245_v24 = vld [vmem:[%s1428_s19 + $0x90] sm:$0xff]  ;;  %v246_v25 = vld [vmem:[%s1428_s19 + $0x98] sm:$0xff]  ;;  %v247_v26 = vld [vmem:[%s1428_s19 + $0xa0] sm:$0xff] }
  0x22   : > { %1059 = vmatprep.mubr.msk.f32.mxu0 %vm270_vm0, %v231_v10  ;;  %v248_v27 = vld [vmem:[%s1428_s19 + $0xa8] sm:$0xff]  ;;  %v249_v28 = vld [vmem:[%s1428_s19 + $0xb0] sm:$0xff]  ;;  %v250_v29 = vld [vmem:[%s1428_s19 + $0xb8] sm:$0xff] }
  0x23   : > { %v251_v30 = vld [vmem:[%s1428_s19 + $0xc0] sm:$0xff]  ;;  %v252_v31 = vld [vmem:[%s1428_s19 + $0xc8] sm:$0xff]  ;;  %v253_v32 = vld [vmem:[%s1428_s19 + $0xd0] sm:$0xff] }
  0x24   : > { %v254_v33 = vld [vmem:[%s1428_s19 + $0xd8] sm:$0xff]  ;;  %v255_v34 = vld [vmem:[%s1428_s19 + $0xe0] sm:$0xff]  ;;  %v256_v35 = vld [vmem:[%s1428_s19 + $0xe8] sm:$0xff] }
  0x25   : > { %1060 = vmatmul.mubr.msk.f32.gmra.mrb[4].mxu0 %vm270_vm0, %v232_v11  ;;  %v257_v36 = vld [vmem:[%s1428_s19 + $0xf0] sm:$0xff]  ;;  %v258_v37 = vld [vmem:[%s1428_s19 + $0xf8] sm:$0xff]  ;;  %s1271_s19 = scalar_lea.vmem %s1270_s18, 64 }
  0x26   : > { %1062 = vmatprep.mubr.msk.f32.mxu0 %vm270_vm0, %v233_v12  ;;  %p1273_p1 = scmp.lt.s32.totalorder %s1271_s19, %s1265_s16 }
  0x28   : > { %p1274_p2 = por %p1273_p1, %p1272_p0 }
  0x29   : > { %1063 = vmatmul.mubr.msk.f32.gmra.mrb[6].mxu0 %vm270_vm0, %v234_v13 }
  0x2a   : > { %1065 = vmatprep.mubr.msk.f32.mxu0 %vm270_vm0, %v235_v14  ;;  %p1275_p3 = pnand %p1274_p2, %p1268_p13 }
  0x2d   : > { %1066 = vmatmul.mubr.msk.f32.gmra.mrb[8].mxu0 %vm270_vm0, %v236_v15 }
  0x2e   : > { %1068 = vmatprep.mubr.msk.f32.mxu0 %vm270_vm0, %v237_v16 }
  0x31   : > { %1069 = vmatmul.mubr.msk.f32.gmra.mrb[10].mxu0 %vm270_vm0, %v238_v17 }
  0x32   : > { %1071 = vmatprep.mubr.msk.f32.mxu0 %vm270_vm0, %v239_v18 }
  0x35   : > { %1072 = vmatmul.mubr.msk.f32.gmra.mrb[12].mxu0 %vm270_vm0, %v240_v19 }
  0x36   : > { %1074 = vmatprep.mubr.msk.f32.mxu0 %vm270_vm0, %v241_v20 }
  0x39   : > { %1075 = vmatmul.mubr.msk.f32.gmra.mrb[14].mxu0 %vm270_vm0, %v242_v21 }
  0x3a   : > { %1077 = vmatprep.mubr.msk.f32.mxu0 %vm270_vm0, %v243_v22 }
  0x3d   : > { %1078 = vmatmul.mubr.msk.f32.gmra.mrb[16].mxu0 %vm270_vm0, %v244_v23 }
  0x3e   : > { %1080 = vmatprep.mubr.msk.f32.mxu0 %vm270_vm0, %v245_v24 }
  0x41   : > { %1081 = vmatmul.mubr.msk.f32.gmra.mrb[18].mxu0 %vm270_vm0, %v246_v25 }
  0x42   : > { %1083 = vmatprep.mubr.msk.f32.mxu0 %vm270_vm0, %v247_v26 }
  0x45   : > { %1084 = vmatmul.mubr.msk.f32.gmra.mrb[20].mxu0 %vm270_vm0, %v248_v27 }
  0x46   : > { %1086 = vmatprep.mubr.msk.f32.mxu0 %vm270_vm0, %v249_v28 }
  0x49   : > { %1087 = vmatmul.mubr.msk.f32.gmra.mrb[22].mxu0 %vm270_vm0, %v250_v29 }
  0x4a   : > { %1089 = vmatprep.mubr.msk.f32.mxu0 %vm270_vm0, %v251_v30 }
  0x4d   : > { %1090 = vmatmul.mubr.msk.f32.gmra.mrb[24].mxu0 %vm270_vm0, %v252_v31 }
  0x4e   : > { %1092 = vmatprep.mubr.msk.f32.mxu0 %vm270_vm0, %v253_v32 }
  0x51   : > { %1093 = vmatmul.mubr.msk.f32.gmra.mrb[26].mxu0 %vm270_vm0, %v254_v33 }
  0x52   : > { %1095 = vmatprep.mubr.msk.f32.mxu0 %vm270_vm0, %v255_v34 }
  0x55   : > { %1096 = vmatmul.mubr.msk.f32.gmra.mrb[28].mxu0 %vm270_vm0, %v256_v35 }
  0x56   : > { %1098 = vmatprep.mubr.msk.f32.mxu0 %vm270_vm0, %v257_v36 }
  0x59   : > { %1099 = vmatmul.mubr.msk.f32.gmra.mrb[30].mxu0 %vm270_vm0, %v258_v37 }
  0xf0   : > { %v1055_v40 = vpop.f32.mrb[0].mxu0 }
  0xf1   : > { %v439_v41 = vadd.f32 %v1055_v40, %v1504_v39  ;;  %v433_v42 = vpop.f32.mrb[1].mxu0 }
  0xf2   : > { %v434_v43 = vadd.f32 %v1504_v39, %v433_v42 }
  0xf3   : > { %1197 = vtanh.f32 %v439_v41 }
  0xf4   : > { %1199 = vtanh.f32 %v434_v43  ;;  %v1058_v44 = vpop.f32.mrb[2].mxu0 }
  0xf5   : > { %v449_v45 = vadd.f32 %v1058_v44, %v1504_v39  ;;  %v443_v46 = vpop.f32.mrb[3].mxu0 }
  0xf6   : > { %v444_v47 = vadd.f32 %v1504_v39, %v443_v46 }
  0xf7   : > { %1201 = vtanh.f32 %v449_v45 }
  0xf8   : > { %1203 = vtanh.f32 %v444_v47  ;;  %v1061_v48 = vpop.f32.mrb[4].mxu0 }
  0xf9   : > { %v459_v49 = vadd.f32 %v1061_v48, %v1504_v39  ;;  %v453_v50 = vpop.f32.mrb[5].mxu0 }
  0xfa   : > { %v454_v51 = vadd.f32 %v1504_v39, %v453_v50 }
  0xfb   : > { %1205 = vtanh.f32 %v459_v49 }
  0xfc   : > { %1207 = vtanh.f32 %v454_v51  ;;  %v1064_v52 = vpop.f32.mrb[6].mxu0 }
  0xfd   : > { %v1512_v53 = vpop.eup %1197  ;;  %v469_v54 = vadd.f32 %v1064_v52, %v1504_v39  ;;  %v463_v55 = vpop.f32.mrb[7].mxu0 }
  0xfe   : > { %v1515_v56 = vpop.eup %1199  ;;  %v464_v57 = vadd.f32 %v1504_v39, %v463_v55 }
  0xff   : > { %1209 = vtanh.f32 %v469_v54  ;;  %v1112_v58 = vpack.c.bf16 %v1512_v53, %v1515_v56 }
 0x100   : > { %1211 = vtanh.f32 %v464_v57  ;;  %v1067_v59 = vpop.f32.mrb[8].mxu0 }
 0x101   : > { %v1520_v60 = vpop.eup %1201  ;;  %v479_v61 = vadd.f32 %v1067_v59, %v1504_v39  ;;  %v473_v62 = vpop.f32.mrb[9].mxu0 }
 0x102   : > { %v1523_v63 = vpop.eup %1203  ;;  %v474_v0 = vadd.f32 %v1504_v39, %v473_v62 }
 0x103   : > { %1213 = vtanh.f32 %v479_v61  ;;  %v1118_v1 = vpack.c.bf16 %v1520_v60, %v1523_v63 }
 0x104   : > { %1215 = vtanh.f32 %v474_v0  ;;  %v1070_v2 = vpop.f32.mrb[10].mxu0 }
 0x105   : > { %v1528_v3 = vpop.eup %1205  ;;  %v489_v4 = vadd.f32 %v1070_v2, %v1504_v39  ;;  %v483_v5 = vpop.f32.mrb[11].mxu0 }
 0x106   : > { %v1531_v6 = vpop.eup %1207  ;;  %v484_v7 = vadd.f32 %v1504_v39, %v483_v5 }
 0x107   : > { %1217 = vtanh.f32 %v489_v4  ;;  %v1124_v8 = vpack.c.bf16 %v1528_v3, %v1531_v6  ;;  %v626_v6 = vstv %s625_s6 }
 0x108   : > { %1219 = vtanh.f32 %v484_v7  ;;  %v1073_v9 = vpop.f32.mrb[12].mxu0 }
 0x109   : > { %v1536_v10 = vpop.eup %1209  ;;  %v499_v11 = vadd.f32 %v1073_v9, %v1504_v39  ;;  %v493_v12 = vpop.f32.mrb[13].mxu0 }
 0x10a   : > { %v1539_v13 = vpop.eup %1211  ;;  %v494_v14 = vadd.f32 %v1504_v39, %v493_v12 }
 0x10b   : > { %1221 = vtanh.f32 %v499_v11  ;;  %v1130_v15 = vpack.c.bf16 %v1536_v10, %v1539_v13 }
 0x10c   : > { %1223 = vtanh.f32 %v494_v14  ;;  %v1076_v16 = vpop.f32.mrb[14].mxu0 }
 0x10d   : > { %v1544_v17 = vpop.eup %1213  ;;  %v509_v18 = vadd.f32 %v1076_v16, %v1504_v39  ;;  %v503_v19 = vpop.f32.mrb[15].mxu0 }
 0x10e   : > { %v1547_v20 = vpop.eup %1215  ;;  %v504_v21 = vadd.f32 %v1504_v39, %v503_v19 }
 0x10f   : > { %1225 = vtanh.f32 %v509_v18  ;;  %v1136_v22 = vpack.c.bf16 %v1544_v17, %v1547_v20  ;;  %v1329_v17 = vmov 1966171168  }
 0x110   : > { %1227 = vtanh.f32 %v504_v21  ;;  %v1079_v23 = vpop.f32.mrb[16].mxu0  ;;  %v803_v20 = vunpack.c.l.s4 %v1329_v17 }
 0x111   : > { %v1552_v24 = vpop.eup %1217  ;;  %v519_v25 = vadd.f32 %v1079_v23, %v1504_v39  ;;  %v513_v26 = vpop.f32.mrb[17].mxu0 }
 0x112   : > { %v1555_v27 = vpop.eup %1219  ;;  %v514_v28 = vadd.f32 %v1504_v39, %v513_v26 }
 0x113   : > { %1229 = vtanh.f32 %v519_v25  ;;  %v1142_v29 = vpack.c.bf16 %v1552_v24, %v1555_v27  ;;  %v804_v24 = vunpack.c.0.s8 %v803_v20 }
 0x114   : > { %1231 = vtanh.f32 %v514_v28  ;;  %v1082_v30 = vpop.f32.mrb[18].mxu0 }
 0x115   : > { %v1560_v31 = vpop.eup %1221  ;;  %v529_v32 = vadd.f32 %v1082_v30, %v1504_v39  ;;  %v523_v33 = vpop.f32.mrb[19].mxu0 }
 0x116   : > { %v1563_v34 = vpop.eup %1223  ;;  %v524_v35 = vadd.f32 %v1504_v39, %v523_v33 }
 0x117   : > { %1233 = vtanh.f32 %v529_v32  ;;  %v1148_v36 = vpack.c.bf16 %v1560_v31, %v1563_v34 }
 0x118   : > { %1235 = vtanh.f32 %v524_v35  ;;  %v1085_v37 = vpop.f32.mrb[20].mxu0 }
 0x119   : > { %v1568_v40 = vpop.eup %1225  ;;  %v539_v41 = vadd.f32 %v1085_v37, %v1504_v39  ;;  %v533_v42 = vpop.f32.mrb[21].mxu0 }
 0x11a   : > { %v1571_v43 = vpop.eup %1227  ;;  %v534_v44 = vadd.f32 %v1504_v39, %v533_v42 }
 0x11b   : > { %1237 = vtanh.f32 %v539_v41  ;;  %v1154_v45 = vpack.c.bf16 %v1568_v40, %v1571_v43 }
 0x11c   : > { %1239 = vtanh.f32 %v534_v44  ;;  %v1088_v46 = vpop.f32.mrb[22].mxu0 }
 0x11d   : > { %v1230_v47 = vpop.eup %1229  ;;  %v549_v48 = vadd.f32 %v1088_v46, %v1504_v39  ;;  %v543_v49 = vpop.f32.mrb[23].mxu0 }
 0x11e   : > { %v1232_v50 = vpop.eup %1231  ;;  %v544_v52 = vadd.f32 %v1504_v39, %v543_v49 }
 0x11f   : > { %v1109_v54 = vpack.c.bf16 %v1230_v47, %v1232_v50  ;;  %1241 = vtanh.f32 %v549_v48 }
 0x120   : > { %1243 = vtanh.f32 %v544_v52  ;;  %v1091_v55 = vpop.f32.mrb[24].mxu0 }
 0x121   : > { %v1234_v57 = vpop.eup %1233  ;;  %1111 = vmatprep.subr.msk.bf16.mxu1 %vm1579_vm1, %v1109_v54  ;;  %v559_v59 = vadd.f32 %v1091_v55, %v1504_v39  ;;  %v553_v61 = vpop.f32.mrb[25].mxu0 }
 0x122   : > { %v1236_v62 = vpop.eup %1235  ;;  %1114 = vmatpush3.bf16.xpose.msk.msra.mxu1 %vm1579_vm1, %v1112_v58  ;;  %v554_v0 = vadd.f32 %v1504_v39, %v553_v61 }
 0x123   : > { %v1115_v2 = vpack.c.bf16 %v1234_v57, %v1236_v62  ;;  %1245 = vtanh.f32 %v559_v59 }
 0x124   : > { %1247 = vtanh.f32 %v554_v0  ;;  %v1094_v4 = vpop.f32.mrb[26].mxu0 }
 0x125   : > { %v1238_v5 = vpop.eup %1237  ;;  %1117 = vmatprep.subr.msk.bf16.mxu1 %vm1579_vm1, %v1115_v2  ;;  %v569_v7 = vadd.f32 %v1094_v4, %v1504_v39  ;;  %v563_v9 = vpop.f32.mrb[27].mxu0 }
 0x126   : > { %v1240_v11 = vpop.eup %1239  ;;  %v564_v12 = vadd.f32 %v1504_v39, %v563_v9 }
 0x127   : > { %v1121_v53 = vpack.c.bf16 %v1238_v5, %v1240_v11  ;;  %1249 = vtanh.f32 %v569_v7 }
 0x128   : > { %1251 = vtanh.f32 %v564_v12  ;;  %v1097_v56 = vpop.f32.mrb[28].mxu0 }
 0x129   : > { %v1242_v58 = vpop.eup %1241  ;;  %v579_v14 = vadd.f32 %v1097_v56, %v1504_v39  ;;  %v573_v16 = vpop.f32.mrb[29].mxu0 }
 0x12a   : > { %v1244_v18 = vpop.eup %1243  ;;  %1120 = vmatpush3.bf16.xpose.msk.msra.mxu1 %vm1579_vm1, %v1118_v1  ;;  %v574_v19 = vadd.f32 %v1504_v39, %v573_v16 }
 0x12b   : > { %1123 = vmatprep.subr.msk.bf16.mxu1 %vm1579_vm1, %v1121_v53  ;;  %v1127_v21 = vpack.c.bf16 %v1242_v58, %v1244_v18  ;;  %1253 = vtanh.f32 %v579_v14 }
 0x12c   : > { %1255 = vtanh.f32 %v574_v19  ;;  %v1100_v23 = vpop.f32.mrb[30].mxu0 }
 0x12d   : > { %v1246_v25 = vpop.eup %1245  ;;  %v589_v26 = vadd.f32 %v1100_v23, %v1504_v39  ;;  %v583_v28 = vpop.f32.mrb[31].mxu0 }
 0x12e   : > { %v1248_v30 = vpop.eup %1247  ;;  %v584_v32 = vadd.f32 %v1504_v39, %v583_v28 }
 0x12f   : > { %v1133_v60 = vpack.c.bf16 %v1246_v25, %v1248_v30  ;;  %1257 = vtanh.f32 %v589_v26 }
 0x130   : > { %1259 = vtanh.f32 %v584_v32 }
 0x131   : > { %v1250_v63 = vpop.eup %1249 }
 0x132   : > { %v1252_v1 = vpop.eup %1251  ;;  %1126 = vmatpush3.bf16.xpose.msk.msra.mxu1 %vm1579_vm1, %v1124_v8 }
 0x133   : > { %1129 = vmatprep.subr.msk.bf16.mxu1 %vm1579_vm1, %v1127_v21  ;;  %v1139_v33 = vpack.c.bf16 %v1250_v63, %v1252_v1 }
 0x135   : > { %v1254_v35 = vpop.eup %1253 }
 0x136   : > { %v1256_v37 = vpop.eup %1255 }
 0x137   : > { %v1145_v41 = vpack.c.bf16 %v1254_v35, %v1256_v37 }
 0x139   : > { %v1258_v42 = vpop.eup %1257 }
 0x13a   : > { %v1260_v39 = vpop.eup %1259  ;;  %1132 = vmatpush3.bf16.xpose.msk.msra.mxu1 %vm1579_vm1, %v1130_v15 }
 0x13b   : > { %1135 = vmatprep.subr.msk.bf16.mxu1 %vm1579_vm1, %v1133_v60  ;;  %v1151_v3 = vpack.c.bf16 %v1258_v42, %v1260_v39 }
 0x142   : > { %1138 = vmatpush3.bf16.xpose.msk.msra.mxu1 %vm1579_vm1, %v1136_v22  ;;  %v805_v22 = vlaneseq }
 0x143   : > { %1141 = vmatprep.subr.msk.bf16.mxu1 %vm1579_vm1, %v1139_v33 }
 0x144   : > { %v806_v27 = vshrl.u32 %v805_v22, 7  ;;  %vm819_vm2 = vcmp.lt.s32.totalorder %v805_v22, 256 }
 0x146   : > { %v807_v31 = vsub.s32 %v804_v24, %v806_v27 }
 0x14a   : > { %1144 = vmatpush3.bf16.xpose.msk.msra.mxu1 %vm1579_vm1, %v1142_v29 }
 0x14b   : > { %1147 = vmatprep.subr.msk.bf16.mxu1 %vm1579_vm1, %v1145_v41 }
 0x152   : > { %1150 = vmatpush3.bf16.xpose.msk.msra.mxu1 %vm1579_vm1, %v1148_v36 }
 0x153   : > { %1153 = vmatprep.subr.msk.bf16.mxu1 %vm1579_vm1, %v1151_v3 }
 0x15a   : > { %1156 = vmatpush3.bf16.xpose.msk.msra.mxu1 %vm1579_vm1, %v1154_v45 }
 0x161   : > { %1044 = vmatmul.mubr.msk.f32.vlgmr.msra.gmra.mrb[0].mxu1 %vm270_vm0, %v1497_v38 }
 0x234   : > { %v792_v8 = vpop.f32.mrb[0].mxu1 }
 0x235   : > { %v793_v10 = vadd.f32 %v792_v8, %v626_v6  ;;  %v794_v13 = vpop.f32.mrb[1].mxu1 }
 0x236   : > { %v795_v15 = vadd.f32 %v794_v13, %v626_v6 }
 0x237   : > { %1261 = vtanh.f32 %v793_v10 }
 0x238   : > { %1263 = vtanh.f32 %v795_v15 }
 0x241   : > { %v1262_v29 = vpop.eup %1261 }
 0x242   : > { %v1264_v38 = vpop.eup %1263 }
 0x243   : > { %v801_v34 = vcombine.low %v1262_v29, %v1264_v38 }
 0x245   : > { %v808_v36 = vrot.slane %v801_v34, %v807_v31 }
 0x247   : > { %v815_v40 = vrot.slane %v808_v36, %v807_v31 }
 0x249   : > { %821 = vst.msk [vmem:[%s219_s9] sm:$0x3] %vm819_vm2, %v815_v40 }
 0x24a   : > { %1278 = shalt.err (!%p1275_p3)
}
 0x24b   : > { %s1279_s12 = scalar_lea.hbm %s1655_s14, 32  ;;  %s1283_s26 = scalar_lea.hbm %s1702_s5, 128 }
 0x24c   : > { %p1280_p4 = scmp.ne.s32.totalorder %s1655_s14, %s1279_s12  ;;  %p1284_p9 = scmp.lt.u32.totalorder %s1655_s14, %s1702_s5 }
 0x24d   : > { %p1285_p10 = scmp.lt.u32.totalorder %s1283_s26, %s1279_s12  ;;  %p1287_p12 = scmp.lt.u32.totalorder %s1279_s12, %s1655_s14 }
 0x24e   : > { %p1281_p7 = pnand %p1280_p4, %p1399_p5 }
 0x24f   : > { %p1286_p11 = por %p1285_p10, %p1284_p9 }
 0x250   : > { %p1282_p8 = pneg %p1281_p7 }
 0x251   : > { %p1288_p13 = por %p1287_p12, %p1286_p11 }
 0x253   : > { %p1289_p0 = pnand %p1288_p13, %p1282_p8 }
 0x255   : > { %1292 = shalt.err (!%p1289_p0)
}
 0x256   : > { %1157 = dma.vmem_to_hbm [thread:$0]  (%p1399_p5), %s1657_s10, 32, %s1655_s14, %s823_s15  }
 0x257 PF: > { %p1163_p1 = scmp.ge.s32.totalorder %s1327_s23, 2  ;;  %s849_s7 = sand.u32 1, %s1315_s20  }
 0x258   : > { %s850_s8 = scalar_lea.sflag [#allocation4], %s849_s7 }
 0x259   : > { %p1160_p2 = pnand %p1163_p1, %p1403_p6 }
 0x25b   : > { %1310 = dma.done.wait (!%p1160_p2), %s850_s8, 32  }
 0x25c   : > { %1312 = vsyncadd (!%p1160_p2), %s850_s8, 4294967264  ;;  %p16_p3 = scmp.ge.s32.totalorder %s1387_s25, 6   ;;  %s1707_s20 = smov %s1319_s21 }
 0x25d   : > { %s1708_s21 = smov %s1323_s22  ;;  %s1709_s22 = smov %s1397_s28 }
 0x25e   : > { %s1710_s23 = smov %s1387_s25  ;;  %18 = sbr.rel (!%p16_p3) target bundleno = 5 (0x5), region = 75 }
 0x265   :  { %855 = vsyncpa [#allocation4], 1 }
 0x266   :  { %857 = vsyncpa [#allocation4 + $0x1], 1 }

</bundles_post_ra>
